<compile_context>
chip_gen: v6e
topology: v6e:2x2x1
jax: 0.10.0
libtpu: 0.0.40
codegen_flags: <defaults>
</compile_context>

<pallas_src>
import jax
import jax.numpy as jnp
from jax.experimental import pallas as pl
from jax.experimental.pallas import tpu as pltpu


def _round_down(a: int, b: int) -> int:
    return (a // b) * b


def _default_num_cores() -> int:
    """2 TensorCores per chip only on v7x; v5e/v6e are single-TC."""
    try:
        kind = jax.devices()[0].device_kind.lower()
    except Exception:
        return 1
    return 2 if "v7" in kind else 1


def _make_mse_partial_kernel(row_tile, num_inner, valid_rows, needs_mask):
    """Builds the kernel body (static config closed over at trace time)."""
    lanes = 128
    groups = row_tile // 8

    def kernel(x_ref, t_ref, out_ref, acc_ref):
        p = pl.program_id(0)
        i = pl.program_id(1)

        # Init the single-vreg running accumulator on the first inner step.
        @pl.when(i == 0)
        def _():
            acc_ref[...] = jnp.zeros_like(acc_ref)

        x = x_ref[...]
        t = t_ref[...]
        # Upcast only when needed (trace-time check; no-op for f32 inputs).
        if x.dtype != jnp.float32:
            x = x.astype(jnp.float32)
        if t.dtype != jnp.float32:
            t = t.astype(jnp.float32)
        d = x - t
        dd = d * d

        if needs_mask:
            # Ragged tail / clamped-OOB blocks: zero out rows past valid_rows.
            logical = p * num_inner + i
            row_start = logical * row_tile
            rows = jax.lax.broadcasted_iota(jnp.int32, (row_tile, lanes), 0)
            dd = jnp.where(rows + row_start < valid_rows, dd, 0.0)

        # Fold the (row_tile, 128) tile into one (8, 128) vreg: pure VPU adds,
        # no accumulator the size of the tile, no per-step cross-lane reduce.
        acc_ref[...] += dd.reshape(groups, 8, lanes).sum(axis=0)

        # Finalize: one sublane reduce to a lane-dense (1, 128) per-core partial.
        @pl.when(i == pl.num_programs(1) - 1)
        def _():
            out_ref[...] = jnp.sum(acc_ref[...], axis=0, keepdims=True)

    return kernel


def content_loss_forward(inputs, target, *, max_row_tile=2048, num_cores=None):
    """Pallas equivalent of ContentLoss.forward.

    Returns (outputs, loss) where outputs == inputs (identity, like the
    PyTorch module) and loss == mean((inputs - target)**2) over ALL elements.
    """
    assert inputs.shape == target.shape, "inputs and target must match"
    total = int(inputs.size)
    lanes = 128

    if num_cores is None:
        num_cores = _default_num_cores()

    # Minimum sublane tile per dtype: 8 for 4-byte, 16 for 2-byte, 32 for 1-byte.
    itemsize = max(jnp.dtype(inputs.dtype).itemsize, jnp.dtype(target.dtype).itemsize)
    sub = max(8, 32 // max(1, itemsize))

    m = pl.cdiv(total, lanes)
    # Slab row count: only bump tiny inputs up to one full sublane tile so the
    # block shape never exceeds the array extent.
    m_rows = m if m >= sub else sub
    padded_total = m_rows * lanes

    def to_slab(a):
        flat = a.reshape(-1)
        if padded_total != total:
            # Ragged tail only: < sub*128 zeros, identical in both operands, so
            # they contribute 0 to the sum of squared differences.
            flat = jnp.pad(flat, (0, padded_total - total))
        return flat.reshape(m_rows, lanes)

    x2d = to_slab(inputs)
    t2d = to_slab(target)

    # Large, dtype-aligned row tile, never larger than the slab.
    row_tile = max(sub, min(_round_down(max_row_tile, sub), _round_down(m_rows, sub)))
    num_blocks = pl.cdiv(m_rows, row_tile)
    num_cores = max(1, min(num_cores, num_blocks))
    num_inner = pl.cdiv(num_blocks, num_cores)
    # Does the grid cover more rows than the slab holds?  (trace-time check)
    needs_mask = num_cores * num_inner * row_tile > m_rows

    if needs_mask:
        # Clamp so partial/overshooting logical blocks never start past the end;
        # the in-kernel mask zeroes any duplicated / out-of-range rows.
        def row_map(p, i):
            return (jnp.minimum(p * num_inner + i, num_blocks - 1), 0)
    else:
        def row_map(p, i):
            return (p * num_inner + i, 0)

    kernel = _make_mse_partial_kernel(row_tile, num_inner, m_rows, needs_mask)

    in_bytes = m_rows * lanes * (jnp.dtype(inputs.dtype).itemsize
                                 + jnp.dtype(target.dtype).itemsize)
    cost = pl.CostEstimate(
        flops=3 * m_rows * lanes,          # sub + mul + accumulate
        transcendentals=0,
        bytes_accessed=in_bytes + num_cores * lanes * 4,
    )

    partials = pl.pallas_call(
        kernel,
        out_shape=jax.ShapeDtypeStruct((num_cores, 1, lanes), jnp.float32),
        grid_spec=pltpu.PrefetchScalarGridSpec(
            num_scalar_prefetch=0,
            grid=(num_cores, num_inner),
            in_specs=[
                pl.BlockSpec((row_tile, lanes), row_map),
                pl.BlockSpec((row_tile, lanes), row_map),
            ],
            out_specs=pl.BlockSpec((None, 1, lanes), lambda p, i: (p, 0, 0)),
            scratch_shapes=[pltpu.VMEM((8, lanes), jnp.float32)],
        ),
        compiler_params=pltpu.CompilerParams(
            dimension_semantics=("parallel", "arbitrary"),
        ),
        cost_estimate=cost,
    )(x2d, t2d)

    # One tiny XLA reduce over num_cores*128 partials + the 1/N scaling.
    loss = jnp.sum(partials) * (1.0 / float(total))

    # forward() returns `inputs` unchanged; the loss is the side output.
    return inputs, loss


def _reference_mse(inputs, target):
    d = inputs.astype(jnp.float32) - target.astype(jnp.float32)
    return jnp.mean(d * d)


def _check(x, t, **kw):
    out, loss = content_loss_forward(x, t, **kw)
    out, loss = jax.block_until_ready((out, loss))
    ref = _reference_mse(x, t)
    assert out.shape == x.shape and jnp.allclose(
        out.astype(jnp.float32), x.astype(jnp.float32)
    ), "forward must return inputs unchanged"
    assert jnp.allclose(loss, ref, rtol=1e-5, atol=1e-6), (
        f"loss mismatch: {loss} vs {ref} (shape={x.shape}, kw={kw})"
    )


if __name__ == "__main__":
    key = jax.random.PRNGKey(0)
    keys = jax.random.split(key, 10)

    # 1) NCHW conv-feature-map shaped inputs, as ContentLoss sees in style
    #    transfer.  total % 128 == 0 -> pure reshape, no padding, no masking.
    x = jax.random.normal(keys[0], (2, 4, 16, 16), dtype=jnp.float32)
    tgt = jax.random.normal(keys[1], (2, 4, 16, 16), dtype=jnp.float32)
    _check(x, tgt)

    # 2) Tiny ragged shape (N*C*H*W not a multiple of 128): pad path.
    x2 = jax.random.normal(keys[2], (2, 3, 7, 5), dtype=jnp.float32)
    t2 = jax.random.normal(keys[3], (2, 3, 7, 5), dtype=jnp.float32)
    _check(x2, t2)

    # 3) Ragged row count + forced 2-core parallel axis: exercises in-kernel
    #    tail masking and the clamped index_map (v7x-style config; merely
    #    sequential on single-TC chips).
    x3 = jax.random.normal(keys[4], (1, 3, 40, 40), dtype=jnp.float32)
    t3 = jax.random.normal(keys[5], (1, 3, 40, 40), dtype=jnp.float32)
    _check(x3, t3, num_cores=2)

    # 4) Multiple inner accumulation steps per core with a small tile.
    x4 = jax.random.normal(keys[6], (2, 16, 32, 32), dtype=jnp.float32)
    t4 = jax.random.normal(keys[7], (2, 16, 32, 32), dtype=jnp.float32)
    _check(x4, t4, max_row_tile=64, num_cores=2)

    # 5) bf16 inputs stay bf16 in HBM (16-row sublane tile) and upcast in-kernel.
    x5 = jax.random.normal(keys[8], (2, 8, 16, 16), dtype=jnp.bfloat16)
    t5 = jax.random.normal(keys[9], (2, 8, 16, 16), dtype=jnp.bfloat16)
    _check(x5, t5)

    print("KERNEL_OK")
</pallas_src>

<mosaic_0001>
module attributes {stable_mosaic.version = 11 : i64} {
  func.func @kernel(%arg0: i32, %arg1: i32, %arg2: memref<16x128xf32, #tpu.memory_space<vmem>>, %arg3: memref<16x128xf32, #tpu.memory_space<vmem>>, %arg4: memref<1x1x128xf32, #tpu.memory_space<vmem>>, %arg5: memref<8x128xf32, #tpu.memory_space<vmem>>) attributes {dimension_semantics = [#tpu.dimension_semantics<parallel>, #tpu.dimension_semantics<arbitrary>], iteration_bounds = array<i64: 1, 1>, scalar_prefetch = 0 : i64, scratch_operands = 1 : i64, tpu.core_type = #tpu.core_type<tc>, window_params = [{transform_indices = @transform_0, window_bounds = array<i64: 16, 128>}, {transform_indices = @transform_1, window_bounds = array<i64: 16, 128>}, {transform_indices = @transform_2, window_bounds = array<i64: 1, 1, 128>}]} {
    %c0_i32 = arith.constant 0 : i32
    %0 = arith.cmpi eq, %arg1, %c0_i32 : i32
    %1 = arith.extui %0 : i1 to i32
    %c0_i32_0 = arith.constant 0 : i32
    %2 = arith.cmpi ne, %1, %c0_i32_0 : i32
    scf.if %2 {
      %cst_10 = arith.constant 0.000000e+00 : f32
      %15 = vector.broadcast %cst_10 : f32 to vector<8x128xf32>
      %c0_11 = arith.constant 0 : index
      %c0_12 = arith.constant 0 : index
      %16 = vector.load %arg5[%c0_11, %c0_12] : memref<8x128xf32, #tpu.memory_space<vmem>>, vector<8x128xf32>
      tpu.vector_store %arg5[%c0_11, %c0_12], %15 {strides = array<i32>} : memref<8x128xf32, #tpu.memory_space<vmem>>, vector<8x128xf32>,
    } else {
    }
    %c0 = arith.constant 0 : index
    %c0_1 = arith.constant 0 : index
    %3 = vector.load %arg2[%c0, %c0_1] : memref<16x128xf32, #tpu.memory_space<vmem>>, vector<16x128xf32>
    %c0_2 = arith.constant 0 : index
    %c0_3 = arith.constant 0 : index
    %4 = vector.load %arg3[%c0_2, %c0_3] : memref<16x128xf32, #tpu.memory_space<vmem>>, vector<16x128xf32>
    %5 = arith.subf %3, %4 : vector<16x128xf32>
    %6 = arith.mulf %5, %5 : vector<16x128xf32>
    %c0_4 = arith.constant 0 : index
    %c0_5 = arith.constant 0 : index
    %7 = vector.load %arg5[%c0_4, %c0_5] : memref<8x128xf32, #tpu.memory_space<vmem>>, vector<8x128xf32>
    %8 = vector.shape_cast %6 : vector<16x128xf32> to vector<2x8x128xf32>
    %cst = arith.constant dense<0.000000e+00> : vector<8x128xf32>
    %9 = vector.multi_reduction <add>, %8, %cst [0] : vector<2x8x128xf32> to vector<8x128xf32>
    %10 = arith.addf %7, %9 : vector<8x128xf32>
    %c0_6 = arith.constant 0 : index
    %c0_7 = arith.constant 0 : index
    %11 = vector.load %arg5[%c0_6, %c0_7] : memref<8x128xf32, #tpu.memory_space<vmem>>, vector<8x128xf32>
    tpu.vector_store %arg5[%c0_6, %c0_7], %10 {strides = array<i32>} : memref<8x128xf32, #tpu.memory_space<vmem>>, vector<8x128xf32>,
    %c0_i32_8 = arith.constant 0 : i32
    %12 = arith.cmpi eq, %arg1, %c0_i32_8 : i32
    %13 = arith.extui %12 : i1 to i32
    %c0_i32_9 = arith.constant 0 : i32
    %14 = arith.cmpi ne, %13, %c0_i32_9 : i32
    scf.if %14 {
      %c0_10 = arith.constant 0 : index
      %c0_11 = arith.constant 0 : index
      %15 = vector.load %arg5[%c0_10, %c0_11] : memref<8x128xf32, #tpu.memory_space<vmem>>, vector<8x128xf32>
      %cst_12 = arith.constant dense<0.000000e+00> : vector<128xf32>
      %16 = vector.multi_reduction <add>, %15, %cst_12 [0] : vector<8x128xf32> to vector<128xf32>
      %17 = vector.shape_cast %16 : vector<128xf32> to vector<1x128xf32>
      %c0_13 = arith.constant 0 : index
      %c0_14 = arith.constant 0 : index
      %c0_15 = arith.constant 0 : index
      %18 = vector.load %arg4[%c0_13, %c0_14, %c0_15] : memref<1x1x128xf32, #tpu.memory_space<vmem>>, vector<1x1x128xf32>
      %19 = vector.shape_cast %18 : vector<1x1x128xf32> to vector<1x128xf32>
      %20 = vector.shape_cast %17 : vector<1x128xf32> to vector<1x1x128xf32>
      tpu.vector_store %arg4[%c0_13, %c0_14, %c0_15], %20 {strides = array<i32>} : memref<1x1x128xf32, #tpu.memory_space<vmem>>, vector<1x1x128xf32>,
    } else {
    }
    return
  }
  func.func @transform_0(%arg0: i32, %arg1: i32) -> (i32, i32) {
    %c1_i32 = arith.constant 1 : i32
    %0 = arith.muli %arg0, %c1_i32 : i32
    %1 = arith.addi %0, %arg1 : i32
    %c0_i32 = arith.constant 0 : i32
    %c0_i32_0 = arith.constant 0 : i32
    return %1, %c0_i32 : i32, i32
  }
  func.func @transform_1(%arg0: i32, %arg1: i32) -> (i32, i32) {
    %c1_i32 = arith.constant 1 : i32
    %0 = arith.muli %arg0, %c1_i32 : i32
    %1 = arith.addi %0, %arg1 : i32
    %c0_i32 = arith.constant 0 : i32
    %c0_i32_0 = arith.constant 0 : i32
    return %1, %c0_i32 : i32, i32
  }
  func.func @transform_2(%arg0: i32, %arg1: i32) -> (i32, i32, i32) {
    %c0_i32 = arith.constant 0 : i32
    %c0_i32_0 = arith.constant 0 : i32
    %c0_i32_1 = arith.constant 0 : i32
    return %arg0, %c0_i32, %c0_i32_0 : i32, i32, i32
  }
}

</mosaic_0001>

<bundles_post_ra>
// kernel: tpu_custom_call.1
= control target key start
LH: loop header
LB: loop body
LE: loop exit
PB: predicated region body
PF: predicated region fallthrough
CT: control target
= control target key end

     0   :  { %7 = vsyncpa [#allocation4], 0  ;;  %s196_s0 = inlined_call_operand.hbm [shape: f32[16,128], index: 0, kind: input, shape index: {}]   ;;  %s197_s1 = inlined_call_operand.hbm [shape: f32[16,128], index: 1, kind: input, shape index: {}]   ;;  %s198_s2 = inlined_call_operand.hbm [shape: f32[1,1,128], index: 2, kind: output, shape index: {}]  }
   0x1   :  { %8 = vsyncpa [#allocation7], 0 }
   0x2   :  { %9 = vsyncpa [#allocation5], 0  ;;  %s167_s9 = smov [#allocation3]  }
   0x3   :  { %s19_s10 = sshll.u32 %s167_s9, 4  ;;  %s20_s10 = int_to_ptr.vmem [resolvable:$true] %s19_s10 }
   0x4   :  { %s109_s11 = scalar_lea.vmem %s20_s10, 256  ;;  %p114_p1 = scmp.lt.s32.totalorder %s20_s10, %s20_s10 }
   0x5   :  { %p110_p0 = scmp.ne.s32.totalorder %s20_s10, %s109_s11  ;;  %p115_p2 = scmp.lt.s32.totalorder %s109_s11, %s109_s11 }
   0x7   :  { %p116_p3 = por %p115_p2, %p114_p1 }
   0x9   :  { %p117_p4 = pnand %p116_p3, %p110_p0 }
   0xb   :  { %120 = shalt.err (!%p117_p4)
}
   0xc   :  { %s168_s12 = smov 128   ;;  %s169_s13 = smov 8  }
   0xd   :  { %25 = dma.hbm_to_vmem [thread:$0]  %s196_s0, 256, %s20_s10, [#allocation4], %s168_s12, %s168_s12, %s169_s13  }
   0xe   :  { %s170_s16 = smov [#allocation6]  }
   0xf   :  { %s35_s17 = sshll.u32 %s170_s16, 4  ;;  %s36_s17 = int_to_ptr.vmem [resolvable:$true] %s35_s17 }
  0x10   :  { %s129_s18 = scalar_lea.vmem %s36_s17, 256  ;;  %p134_p6 = scmp.lt.s32.totalorder %s36_s17, %s36_s17 }
  0x11   :  { %p130_p5 = scmp.ne.s32.totalorder %s36_s17, %s129_s18  ;;  %p135_p7 = scmp.lt.s32.totalorder %s129_s18, %s129_s18 }
  0x13   :  { %p136_p8 = por %p135_p7, %p134_p6 }
  0x15   :  { %p137_p9 = pnand %p136_p8, %p130_p5 }
  0x17   :  { %140 = shalt.err (!%p137_p9)
}
  0x18   :  { %41 = dma.hbm_to_vmem [thread:$0]  %s197_s1, 256, %s36_s17, [#allocation7], %s168_s12, %s168_s12, %s169_s13  }
  0x19   :  { %161 = dma.done.wait [#allocation4], 256  }
  0x1a   :  { %162 = vsyncadd [#allocation4], 4294967040 }
  0x1b   :  { %163 = dma.done.wait [#allocation7], 256  }
  0x1c   :  { %164 = vsyncadd [#allocation7], 4294967040  ;;  %v57_v0 = vld [vmem:[#allocation3] sm:$0xff]  ;;  %v58_v1 = vld [vmem:[#allocation3 + $0x8] sm:$0xff]  ;;  %s171_s0 = smov [#allocation8]  }
  0x1d   :  { %v59_v2 = vld [vmem:[#allocation6] sm:$0xff]  ;;  %v60_v3 = vld [vmem:[#allocation6 + $0x8] sm:$0xff]  ;;  %s86_s21 = sshll.u32 %s171_s0, 4  ;;  %s87_s21 = int_to_ptr.vmem [resolvable:$true] %s86_s21 }
  0x1e   :  { %v61_v4 = vsub.f32 %v57_v0, %v59_v2  ;;  %v62_v5 = vsub.f32 %v58_v1, %v60_v3  ;;  %s141_s1 = scalar_lea.vmem %s87_s21, 16  ;;  %s145_s22 = scalar_lea.vmem %s87_s21, 32 }
  0x1f   :  { %p142_p10 = scmp.ne.s32.totalorder %s87_s21, %s141_s1  ;;  %p146_p11 = scmp.lt.s32.totalorder %s87_s21, %s87_s21 }
  0x20   :  { %v63_v6 = vmul.f32 %v61_v4, %v61_v4  ;;  %v64_v7 = vmul.f32 %v62_v5, %v62_v5  ;;  %p147_p12 = scmp.lt.s32.totalorder %s145_s22, %s141_s1 }
  0x22   :  { %v66_v8 = vadd.f32 %v64_v7, %v63_v6  ;;  %p148_p13 = por %p147_p12, %p146_p11 }
  0x24   :  { %v73_v9 = vrot.slane %v66_v8, 4  ;;  %p149_p0 = pnand %p148_p13, %p142_p10 }
  0x26   :  { %v74_v10 = vadd.f32 %v73_v9, %v66_v8 }
  0x28   :  { %v75_v11 = vrot.slane %v74_v10, 2 }
  0x2a   :  { %v76_v12 = vadd.f32 %v75_v11, %v74_v10 }
  0x2c   :  { %v77_v13 = vrot.slane %v76_v12, 1 }
  0x2e   :  { %v78_v14 = vadd.f32 %v77_v13, %v76_v12 }
  0x30   :  { %79 = vst [vmem:[#allocation8] sm:$0x1] %v78_v14 }
  0x31   :  { %152 = shalt.err (!%p149_p0)
}
  0x32   :  { %89 = dma.vmem_to_hbm [thread:$0]  %s87_s21, 16, %s198_s2, [#allocation5]  }
  0x33   :  { %165 = dma.done.wait [#allocation5], 16  }
  0x34   :  { %166 = vsyncadd [#allocation5], 4294967280 }
  0x35   :  { %93 = vsyncpa [#allocation4], 1 }
  0x36   :  { %94 = vsyncpa [#allocation7], 1 }
  0x37   :  { %95 = vsyncpa [#allocation5], 1 }

</bundles_post_ra>
